<compile_context>
chip_gen: v5e
topology: v5e:2x2
jax: 0.10.0
libtpu: 0.0.40
codegen_flags: <defaults>
</compile_context>

<pallas_src>
import functools

import numpy as np
import jax
import jax.numpy as jnp
from jax import lax
from jax.experimental import pallas as pl
from jax.experimental.pallas import tpu as pltpu


def _round_up(x, m):
    return ((x + m - 1) // m) * m


# ----------------------------------------------------------------------------
# Kernels (one grid step == one capacity tile of TC slots)
# ----------------------------------------------------------------------------
def _train_eval_kernel(labels_ref, eval_idx_ref, cnts_ref, inv_total_ref,
                       clip_ref, new_cnts_ref, ret_ref):
    i = pl.program_id(0)
    last = pl.num_programs(0) - 1
    N = labels_ref.shape[0]          # padded number of training labels
    TC = cnts_ref.shape[1]           # capacity tile width (lanes)
    L = eval_idx_ref.shape[1]        # padded llen (lanes)
    c0 = i * TC                      # first slot id of this capacity tile

    # --- histogram for this tile: hist[c] = #(labels == c0 + c) ------------
    labels = labels_ref[...]                                     # (N, 1), -1 pad
    slot_nc = c0 + lax.broadcasted_iota(jnp.int32, (N, TC), 1)
    onehot_nc = (slot_nc == labels).astype(jnp.float32)          # (N, TC), 0/1
    hist = jnp.dot(jnp.ones((1, N), jnp.float32), onehot_nc,
                   preferred_element_type=jnp.float32)           # (1, TC) on MXU
    new_cnts = cnts_ref[...] + hist
    new_cnts_ref[...] = new_cnts                                 # aliased in place

    # --- gather partial: ret[j] += new_cnts[idx[j]] if idx[j] in this tile --
    slot_cl = c0 + lax.broadcasted_iota(jnp.int32, (TC, L), 0)
    onehot_cl = (slot_cl == eval_idx_ref[...]).astype(jnp.float32)  # (TC, L)
    part = jnp.dot(new_cnts, onehot_cl,
                   preferred_element_type=jnp.float32)           # (1, L) on MXU

    @pl.when(i == 0)
    def _init():
        ret_ref[...] = jnp.zeros_like(ret_ref)

    ret_ref[...] += part

    @pl.when(i == last)
    def _finalize():
        ret_ref[...] = jnp.maximum(ret_ref[...] * inv_total_ref[0], clip_ref[0])


def _eval_kernel(eval_idx_ref, cnts_ref, inv_total_ref, clip_ref, ret_ref):
    i = pl.program_id(0)
    last = pl.num_programs(0) - 1
    TC = cnts_ref.shape[1]
    L = eval_idx_ref.shape[1]
    c0 = i * TC

    slot_cl = c0 + lax.broadcasted_iota(jnp.int32, (TC, L), 0)
    onehot_cl = (slot_cl == eval_idx_ref[...]).astype(jnp.float32)
    part = jnp.dot(cnts_ref[...], onehot_cl,
                   preferred_element_type=jnp.float32)           # (1, L)

    @pl.when(i == 0)
    def _init():
        ret_ref[...] = jnp.zeros_like(ret_ref)

    ret_ref[...] += part

    @pl.when(i == last)
    def _finalize():
        ret_ref[...] = jnp.maximum(ret_ref[...] * inv_total_ref[0], clip_ref[0])


# ----------------------------------------------------------------------------
# pallas_call wrappers
# ----------------------------------------------------------------------------
_SMEM_SPEC = pl.BlockSpec(memory_space=pltpu.MemorySpace.SMEM)
_COMPILER_PARAMS = pltpu.CompilerParams(
    dimension_semantics=("arbitrary",),          # ret accumulates over the grid
    vmem_limit_bytes=32 * 1024 * 1024,           # fits the v7x 64 MiB budget too
)


@functools.partial(jax.jit, static_argnames=("cap_tile",))
def pystat_train_eval(labels2d, eval2d, cnts2d, inv_total, clip, *, cap_tile):
    N = labels2d.shape[0]
    L = eval2d.shape[1]
    C = cnts2d.shape[1]
    return pl.pallas_call(
        _train_eval_kernel,
        out_shape=(
            jax.ShapeDtypeStruct((1, C), jnp.float32),   # updated cnts (aliased)
            jax.ShapeDtypeStruct((1, L), jnp.float32),   # ret, lane-dense
        ),
        grid=(C // cap_tile,),
        in_specs=[
            pl.BlockSpec((N, 1), lambda i: (0, 0)),          # train slots (resident)
            pl.BlockSpec((1, L), lambda i: (0, 0)),          # eval slots (resident)
            pl.BlockSpec((1, cap_tile), lambda i: (0, i)),   # cnts capacity tile
            _SMEM_SPEC,                                      # 1/total scalar (SMEM)
            _SMEM_SPEC,                                      # clip scalar (SMEM)
        ],
        out_specs=(
            pl.BlockSpec((1, cap_tile), lambda i: (0, i)),   # new cnts tile
            pl.BlockSpec((1, L), lambda i: (0, 0)),          # ret accumulator
        ),
        input_output_aliases={2: 0},                         # cnts updated in place
        compiler_params=_COMPILER_PARAMS,
    )(labels2d, eval2d, cnts2d, inv_total, clip)


@functools.partial(jax.jit, static_argnames=("cap_tile",))
def pystat_eval(eval2d, cnts2d, inv_total, clip, *, cap_tile):
    L = eval2d.shape[1]
    C = cnts2d.shape[1]
    return pl.pallas_call(
        _eval_kernel,
        out_shape=jax.ShapeDtypeStruct((1, L), jnp.float32),
        grid=(C // cap_tile,),
        in_specs=[
            pl.BlockSpec((1, L), lambda i: (0, 0)),
            pl.BlockSpec((1, cap_tile), lambda i: (0, i)),
            _SMEM_SPEC,
            _SMEM_SPEC,
        ],
        out_specs=pl.BlockSpec((1, L), lambda i: (0, 0)),
        compiler_params=_COMPILER_PARAMS,
    )(eval2d, cnts2d, inv_total, clip)


# ----------------------------------------------------------------------------
# Module wrapper (dict/total bookkeeping stays on host, numeric path on TPU)
# ----------------------------------------------------------------------------
class NekoPystatPallas:
    def __init__(self, max_capacity=1024, lclipping_freq=0.01, cap_tile=512):
        # Capacity is rounded up to a multiple of the lane-aligned tile so every
        # BlockSpec is unmasked.  (Torch default is 900000; a small capacity is
        # used in the demo — semantics are identical, just a bigger grid.)
        cap_tile = max(128, _round_up(cap_tile, 128))
        capacity = _round_up(max(int(max_capacity), cap_tile), cap_tile)
        self.cap_tile = cap_tile
        self.capacity = capacity
        self.cnts = jnp.zeros((1, capacity), jnp.float32)
        self.total = np.float32(1e-9)      # host-side running total (no readback)
        self.lclipping_freq = float(lclipping_freq)
        self.cdict = {}
        self.training = True

    def _slot(self, ch):
        if ch not in self.cdict:
            self.cdict[ch] = len(self.cdict)
        return self.cdict[ch]

    def _update_total_host(self, n):
        # Same float32 repeated-(+1) semantics as the torch loop, done in O(1):
        # the first +1 rounds 1e-9 away, after that counts are exact ints < 2^24.
        if n <= 0:
            return
        t = np.float32(self.total)
        rem = n
        if t < 1.0:
            t = np.float32(t + np.float32(1.0))
            rem -= 1
        if rem:
            t = np.float32(t + np.float32(rem))
        self.total = t

    def forward(self, gdict, flatten_label, llen):
        train_path = self.training and float(self.total) < 16777009
        # TODO(synk): the Python-dict (cdict/gdict) character->slot bookkeeping
        # has no Pallas equivalent; it stays as host-side glue.
        train_slots = None
        if train_path:
            lab = np.asarray(flatten_label).reshape(-1)
            train_slots = np.array([self._slot(gdict[int(l)]) for l in lab],
                                   np.int32)
        eval_slots = np.array([self._slot(gdict[i]) for i in range(llen)],
                              np.int32)

        # eval slot ids as a lane-dense (1, L_pad) row; -1 pads gather nothing.
        L_pad = _round_up(max(llen, 1), 128)
        eval2d = np.full((1, L_pad), -1, np.int32)
        eval2d[0, :llen] = eval_slots
        eval2d = jnp.asarray(eval2d)

        clip = jnp.full((1,), self.lclipping_freq, jnp.float32)

        if train_path:
            n = int(train_slots.shape[0])
            self._update_total_host(n)                    # total updated on host
            inv_total = jnp.full(
                (1,), np.float32(1.0) / np.float32(self.total), jnp.float32)

            N_pad = _round_up(max(n, 1), 8)
            lab2d = np.full((N_pad, 1), -1, np.int32)     # -1 pad: never counted
            lab2d[:n, 0] = train_slots
            lab2d = jnp.asarray(lab2d)

            new_cnts, ret = pystat_train_eval(
                lab2d, eval2d, self.cnts, inv_total, clip, cap_tile=self.cap_tile)
            self.cnts = new_cnts
        else:
            inv_total = jnp.full(
                (1,), np.float32(1.0) / np.float32(self.total), jnp.float32)
            ret = pystat_eval(eval2d, self.cnts, inv_total, clip,
                              cap_tile=self.cap_tile)
        return ret[0, :llen]

    __call__ = forward


# ----------------------------------------------------------------------------
# Pure-numpy reference mirroring the PyTorch module (float32 arithmetic)
# ----------------------------------------------------------------------------
class _RefPystat:
    def __init__(self, max_capacity=1024, lclipping_freq=0.01):
        self.cnts = np.zeros(max_capacity, np.float32)
        self.total = np.float32(1e-9)
        self.lclipping_freq = lclipping_freq
        self.cdict = {}
        self.training = True

    def forward_eval(self, gdict, llen):
        ret = np.zeros(llen, np.float32)
        for i in range(llen):
            ch = gdict[i]
            if ch not in self.cdict:
                self.cdict[ch] = len(self.cdict)
            ret[i] = self.cnts[self.cdict[ch]]
        return np.clip(ret / self.total, self.lclipping_freq, None)

    def forward(self, gdict, flatten_label, llen):
        if self.training and self.total < 16777009:
            for l in np.asarray(flatten_label).reshape(-1):
                ch = gdict[int(l)]
                if ch not in self.cdict:
                    self.cdict[ch] = len(self.cdict)
                self.cnts[self.cdict[ch]] += 1
                self.total = np.float32(self.total + 1)
            return self.forward_eval(gdict, llen)
        return self.forward_eval(gdict, llen)


# ----------------------------------------------------------------------------
if __name__ == "__main__":
    key = jax.random.PRNGKey(0)
    llen = 37                       # alphabet size
    n_labels = 64                   # flattened training labels per step
    capacity = 1024                 # slot capacity (torch default is 900000)

    gdict = {i: "ch%d" % i for i in range(llen)}
    k1, k2 = jax.random.split(key)
    labels_a = jax.random.randint(k1, (n_labels,), 0, llen, dtype=jnp.int32)
    labels_b = jax.random.randint(k2, (n_labels,), 0, llen, dtype=jnp.int32)
    labels_a_np = np.asarray(labels_a)
    labels_b_np = np.asarray(labels_b)

    mod = NekoPystatPallas(max_capacity=capacity, cap_tile=512)
    ref = _RefPystat(max_capacity=capacity)

    # --- two training-path forwards (histogram + total carried across calls) --
    mod.training = True
    out1 = jax.block_until_ready(mod(gdict, labels_a, llen))
    ref1 = ref.forward(gdict, labels_a_np, llen)
    assert out1.shape == (llen,) and out1.dtype == jnp.float32
    np.testing.assert_allclose(np.asarray(out1), ref1, rtol=1e-5, atol=1e-6)

    out2 = jax.block_until_ready(mod(gdict, labels_b, llen))
    ref2 = ref.forward(gdict, labels_b_np, llen)
    np.testing.assert_allclose(np.asarray(out2), ref2, rtol=1e-5, atol=1e-6)

    # --- eval-path forward (pure gather / normalize / clip) -------------------
    mod.training = False
    ref.training = False
    out3 = jax.block_until_ready(mod(gdict, labels_b, llen))
    ref3 = ref.forward(gdict, labels_b_np, llen)
    np.testing.assert_allclose(np.asarray(out3), ref3, rtol=1e-5, atol=1e-6)

    print("KERNEL_OK")
</pallas_src>

<mosaic_0001>
module attributes {stable_mosaic.version = 11 : i64} {
  func.func @_train_eval_kernel(%arg0: i32, %arg1: memref<64x1xi32, #tpu.memory_space<vmem>>, %arg2: memref<1x128xi32, #tpu.memory_space<vmem>>, %arg3: memref<1x512xf32, #tpu.memory_space<vmem>>, %arg4: memref<1xf32, #tpu.memory_space<smem>>, %arg5: memref<1xf32, #tpu.memory_space<smem>>, %arg6: memref<1x512xf32, #tpu.memory_space<vmem>>, %arg7: memref<1x128xf32, #tpu.memory_space<vmem>>) attributes {dimension_semantics = [#tpu.dimension_semantics<arbitrary>], iteration_bounds = array<i64: 2>, scalar_prefetch = 0 : i64, scratch_operands = 0 : i64, tpu.core_type = #tpu.core_type<tc>, window_params = [{pipeline_mode = #tpu.pipeline_mode<synchronous>, transform_indices = @transform_0, window_bounds = array<i64: 64, 1>}, {pipeline_mode = #tpu.pipeline_mode<synchronous>, transform_indices = @transform_1, window_bounds = array<i64: 1, 128>}, {transform_indices = @transform_2, window_bounds = array<i64: 1, 512>}, {transform_indices = @transform_3, window_bounds = array<i64: 1>}, {transform_indices = @transform_4, window_bounds = array<i64: 1>}, {transform_indices = @transform_5, window_bounds = array<i64: 1, 512>}, {pipeline_mode = #tpu.pipeline_mode<synchronous>, transform_indices = @transform_6, window_bounds = array<i64: 1, 128>}]} {
    %c512_i32 = arith.constant 512 : i32
    %0 = arith.muli %arg0, %c512_i32 : i32
    %c0 = arith.constant 0 : index
    %c0_0 = arith.constant 0 : index
    %1 = vector.load %arg1[%c0, %c0_0] : memref<64x1xi32, #tpu.memory_space<vmem>>, vector<64x1xi32>
    %2 = tpu.iota {dimensions = array<i32: 1>} : vector<64x512xi32>
    %3 = vector.broadcast %0 : i32 to vector<64x512xi32>
    %4 = arith.addi %3, %2 : vector<64x512xi32>
    %5 = vector.broadcast %1 : vector<64x1xi32> to vector<64x512xi32>
    %6 = arith.cmpi eq, %4, %5 : vector<64x512xi32>
    %7 = arith.extui %6 : vector<64x512xi1> to vector<64x512xi32>
    %8 = arith.sitofp %7 : vector<64x512xi32> to vector<64x512xf32>
    %cst = arith.constant 1.000000e+00 : f32
    %9 = vector.broadcast %cst : f32 to vector<1x64xf32>
    %cst_1 = arith.constant dense<0.000000e+00> : vector<1x512xf32>
    %10 = tpu.matmul %9, %8, %cst_1 {dimension_numbers = #tpu.dot_dimension_numbers<[1], [0], [0], [1], [0, 0, 1, 1], [], []>} : vector<1x64xf32>, vector<64x512xf32>, vector<1x512xf32> -> vector<1x512xf32>
    %c0_2 = arith.constant 0 : index
    %c0_3 = arith.constant 0 : index
    %11 = vector.load %arg3[%c0_2, %c0_3] : memref<1x512xf32, #tpu.memory_space<vmem>>, vector<1x512xf32>
    %12 = arith.addf %11, %10 : vector<1x512xf32>
    %c0_4 = arith.constant 0 : index
    %c0_5 = arith.constant 0 : index
    %13 = vector.load %arg6[%c0_4, %c0_5] : memref<1x512xf32, #tpu.memory_space<vmem>>, vector<1x512xf32>
    tpu.vector_store %arg6[%c0_4, %c0_5], %12 {strides = array<i32>} : memref<1x512xf32, #tpu.memory_space<vmem>>, vector<1x512xf32>,
    %14 = tpu.iota {dimensions = array<i32: 0>} : vector<512x128xi32>
    %15 = vector.broadcast %0 : i32 to vector<512x128xi32>
    %16 = arith.addi %15, %14 : vector<512x128xi32>
    %c0_6 = arith.constant 0 : index
    %c0_7 = arith.constant 0 : index
    %17 = vector.load %arg2[%c0_6, %c0_7] : memref<1x128xi32, #tpu.memory_space<vmem>>, vector<1x128xi32>
    %18 = vector.broadcast %17 : vector<1x128xi32> to vector<512x128xi32>
    %19 = arith.cmpi eq, %16, %18 : vector<512x128xi32>
    %20 = arith.extui %19 : vector<512x128xi1> to vector<512x128xi32>
    %21 = arith.sitofp %20 : vector<512x128xi32> to vector<512x128xf32>
    %cst_8 = arith.constant dense<0.000000e+00> : vector<1x128xf32>
    %22 = tpu.matmul %12, %21, %cst_8 {dimension_numbers = #tpu.dot_dimension_numbers<[1], [0], [0], [1], [0, 0, 1, 1], [], []>} : vector<1x512xf32>, vector<512x128xf32>, vector<1x128xf32> -> vector<1x128xf32>
    %c0_i32 = arith.constant 0 : i32
    %23 = arith.cmpi eq, %arg0, %c0_i32 : i32
    %24 = arith.extui %23 : i1 to i32
    %c0_i32_9 = arith.constant 0 : i32
    %25 = arith.cmpi ne, %24, %c0_i32_9 : i32
    scf.if %25 {
      %cst_15 = arith.constant 0.000000e+00 : f32
      %32 = vector.broadcast %cst_15 : f32 to vector<1x128xf32>
      %c0_16 = arith.constant 0 : index
      %c0_17 = arith.constant 0 : index
      %33 = vector.load %arg7[%c0_16, %c0_17] : memref<1x128xf32, #tpu.memory_space<vmem>>, vector<1x128xf32>
      tpu.vector_store %arg7[%c0_16, %c0_17], %32 {strides = array<i32>} : memref<1x128xf32, #tpu.memory_space<vmem>>, vector<1x128xf32>,
    } else {
    }
    %c0_10 = arith.constant 0 : index
    %c0_11 = arith.constant 0 : index
    %26 = vector.load %arg7[%c0_10, %c0_11] : memref<1x128xf32, #tpu.memory_space<vmem>>, vector<1x128xf32>
    %27 = arith.addf %26, %22 : vector<1x128xf32>
    %c0_12 = arith.constant 0 : index
    %c0_13 = arith.constant 0 : index
    %28 = vector.load %arg7[%c0_12, %c0_13] : memref<1x128xf32, #tpu.memory_space<vmem>>, vector<1x128xf32>
    tpu.vector_store %arg7[%c0_12, %c0_13], %27 {strides = array<i32>} : memref<1x128xf32, #tpu.memory_space<vmem>>, vector<1x128xf32>,
    %c1_i32 = arith.constant 1 : i32
    %29 = arith.cmpi eq, %arg0, %c1_i32 : i32
    %30 = arith.extui %29 : i1 to i32
    %c0_i32_14 = arith.constant 0 : i32
    %31 = arith.cmpi ne, %30, %c0_i32_14 : i32
    scf.if %31 {
      %c0_15 = arith.constant 0 : index
      %c0_16 = arith.constant 0 : index
      %32 = vector.load %arg7[%c0_15, %c0_16] : memref<1x128xf32, #tpu.memory_space<vmem>>, vector<1x128xf32>
      %c0_17 = arith.constant 0 : index
      %33 = memref.load %arg4[%c0_17] : memref<1xf32, #tpu.memory_space<smem>>
      %34 = vector.broadcast %33 : f32 to vector<1x128xf32>
      %35 = arith.mulf %32, %34 : vector<1x128xf32>
      %c0_18 = arith.constant 0 : index
      %36 = memref.load %arg5[%c0_18] : memref<1xf32, #tpu.memory_space<smem>>
      %37 = vector.broadcast %36 : f32 to vector<1x128xf32>
      %38 = arith.maximumf %35, %37 : vector<1x128xf32>
      %c0_19 = arith.constant 0 : index
      %c0_20 = arith.constant 0 : index
      %39 = vector.load %arg7[%c0_19, %c0_20] : memref<1x128xf32, #tpu.memory_space<vmem>>, vector<1x128xf32>
      tpu.vector_store %arg7[%c0_19, %c0_20], %38 {strides = array<i32>} : memref<1x128xf32, #tpu.memory_space<vmem>>, vector<1x128xf32>,
    } else {
    }
    return
  }
  func.func @transform_0(%arg0: i32) -> (i32, i32) {
    %c0_i32 = arith.constant 0 : i32
    %c0_i32_0 = arith.constant 0 : i32
    %c0_i32_1 = arith.constant 0 : i32
    return %c0_i32, %c0_i32_0 : i32, i32
  }
  func.func @transform_1(%arg0: i32) -> (i32, i32) {
    %c0_i32 = arith.constant 0 : i32
    %c0_i32_0 = arith.constant 0 : i32
    %c0_i32_1 = arith.constant 0 : i32
    return %c0_i32, %c0_i32_0 : i32, i32
  }
  func.func @transform_2(%arg0: i32) -> (i32, i32) {
    %c0_i32 = arith.constant 0 : i32
    %c0_i32_0 = arith.constant 0 : i32
    return %c0_i32, %arg0 : i32, i32
  }
  func.func @transform_3(%arg0: i32) -> i32 {
    %c0_i32 = arith.constant 0 : i32
    %c0_i32_0 = arith.constant 0 : i32
    return %c0_i32 : i32
  }
  func.func @transform_4(%arg0: i32) -> i32 {
    %c0_i32 = arith.constant 0 : i32
    %c0_i32_0 = arith.constant 0 : i32
    return %c0_i32 : i32
  }
  func.func @transform_5(%arg0: i32) -> (i32, i32) {
    %c0_i32 = arith.constant 0 : i32
    %c0_i32_0 = arith.constant 0 : i32
    return %c0_i32, %arg0 : i32, i32
  }
  func.func @transform_6(%arg0: i32) -> (i32, i32) {
    %c0_i32 = arith.constant 0 : i32
    %c0_i32_0 = arith.constant 0 : i32
    %c0_i32_1 = arith.constant 0 : i32
    return %c0_i32, %c0_i32_0 : i32, i32
  }
}

</mosaic_0001>

<bundles_post_ra>
// kernel: pystat_train_eval.1
= control target key start
LH: loop header
LB: loop body
LE: loop exit
PB: predicated region body
PF: predicated region fallthrough
CT: control target
= control target key end

     0   :  { %s2244_s0 = inlined_call_operand.vmem [shape: s32[64,1], index: 0, kind: input, shape index: {}]   ;;  %s2245_s1 = inlined_call_operand.vmem [shape: s32[1,128], index: 1, kind: input, shape index: {}]   ;;  %s2246_s2 = inlined_call_operand.hbm [shape: f32[1,1024], index: 2, kind: input, shape index: {}, may-alias: {2,5}]   ;;  %s2247_s3 = inlined_call_operand.<no memory space> [shape: f32[1], index: 3, kind: input, shape index: {}]   ;;  %s2248_s4 = inlined_call_operand.<no memory space> [shape: f32[1], index: 4, kind: input, shape index: {}]   ;;  %s2249_s5 = inlined_call_operand.hbm [shape: f32[1,1024], index: 5, kind: output, shape index: {0}, may-alias: {2,5}]   ;;  %s2250_s6 = inlined_call_operand.hbm [shape: f32[1,128], index: 6, kind: output, shape index: {1}]  }
   0x1   :  { %12 = sst [smem:[#allocation2]] %s2247_s3 }
   0x2   :  { %13 = sst [smem:[#allocation3]] %s2248_s4 }
   0x3   :  { %14 = vsyncpa [#allocation5], 0 }
   0x4   :  { %16 = vsyncpa [#allocation5 + $0x1], 0 }
   0x5   :  { %17 = vsyncpa [#allocation6], 0 }
   0x6   :  { %19 = vsyncpa [#allocation6 + $0x1], 0 }
   0x7   :  { %20 = vsyncpa [#allocation9], 0  ;;  %s1506_s25 = smov 0   ;;  %s1508_s26 = smov 0  }
   0x8   :  { %s1510_s27 = smov 0   ;;  %s1512_s28 = smov 0  }
   0x9 LB: > { %s1527_s3 = sadd.s32 4294967295, %s1459_s28   ;;  %s1058_s4 = sadd.s32 4294967294, %s1459_s28   ;;  %s1459_s28 = sphi %s1512_s28, %s2268_s28   ;;  %s1455_s27 = sphi %s1510_s27, %s2267_s27   ;;  %s1451_s26 = sphi %s1508_s26, %s2266_s26   ;;  %s1447_s25 = sphi %s1506_s25, %s2265_s25  }
   0xa   : > { %s1531_s29 = sadd.s32 1, %s1459_s28   ;;  %s75_s30 = sadd.s32 1, %s1455_s27 }
   0xb   : > { %s72_s7 = ssub.s32 %s1459_s28, %s1531_s29  ;;  %p82_p0 = scmp.ne.s32.totalorder %s1455_s27, %s1451_s26 }
   0xc   : > { %p73_p1 = scmp.eq.s32.totalorder %s72_s7, 0  ;;  %p83_p2 = scmp.eq.s32.totalorder %s1459_s28, 0 }
   0xd   : > { %p88_p3 = scmp.ne.s32.totalorder %s1451_s26, %s1447_s25  ;;  %p89_p4 = scmp.eq.s32.totalorder %s1527_s3, 0 }
   0xe   : > { %s1543_s8 = scalar_select %p73_p1, %s1455_s27, %s75_s30  }
   0xf   : > { %p1545_p5 = por %p83_p2, %p82_p0  ;;  %p1549_p6 = por %p89_p4, %p88_p3 }
  0x10   : > { %p2251_p7 = scmp.eq.s32.totalorder %s1527_s3, 1  ;;  %p160_p8 = scmp.eq.s32.totalorder %s1058_s4, 1 }
  0x11   : > { %p1287_p10 = scmp.lt.s32.totalorder %s1459_s28, 2  ;;  %s213_s13 = sand.u32 1, %s1455_s27  }
  0x12   : > { %p1558_p11 = por %p2251_p7, %p82_p0  ;;  %p1562_p12 = por %p160_p8, %p88_p3 }
  0x13   : > { %s1062_s14 = sshll.u32 %s1459_s28, 2  ;;  %s1061_s15 = sshll.u32 %s213_s13, 2 }
  0x14   : > { %s221_s18 = scalar_lea.hbm %s2246_s2, %s1062_s14  ;;  %s217_s20 = scalar_lea.vmem [#allocation4], %s1061_s15 }
  0x15   : > { %s223_s19 = sshll.u32 %s221_s18, 4  ;;  %s225_s21 = sshll.u32 %s217_s20, 4  ;;  %s224_s19 = int_to_ptr.hbm [resolvable:$true] %s223_s19  ;;  %s226_s21 = int_to_ptr.vmem [resolvable:$true] %s225_s21 }
  0x16   : > { %p1573_p13 = pnand %p1287_p10, %p1545_p5  ;;  %p1063_p0 = scmp.ge.s32.totalorder %s1459_s28, 1 }
  0x17   : > { %p230_p1 = scmp.lt.s32.totalorder %s1459_s28, 3  ;;  %s214_s23 = scalar_lea.sflag [#allocation5], %s213_s13 }
  0x18   : > { %s1331_s24 = sshra.s32 %s224_s19, 4  ;;  %p1335_p3 = pneg %p1573_p13  ;;  %s1332_s24 = int_to_ptr.hbm [resolvable:$true] %s1331_s24 }
  0x19   : > { %s1333_s4 = scalar_lea.hbm %s1332_s24, 4  ;;  %s1338_s9 = scalar_lea.hbm %s2246_s2, 8 }
  0x1a   : > { %p1334_p2 = scmp.ne.s32.totalorder %s1332_s24, %s1333_s4  ;;  %p1339_p5 = scmp.lt.s32.totalorder %s1332_s24, %s2246_s2 }
  0x1b   : > { %p1340_p10 = scmp.lt.s32.totalorder %s1338_s9, %s1333_s4 }
  0x1c   : > { %p1336_p4 = pnand %p1335_p3, %p1334_p2 }
  0x1d   : > { %p1341_p9 = por %p1340_p10, %p1339_p5 }
  0x1e   : > { %p1337_p8 = pneg %p1336_p4 }
  0x20   : > { %p1342_p7 = pnand %p1341_p9, %p1337_p8 }
  0x22   : > { %1345 = shalt.err (!%p1342_p7)
}
  0x23   : > { %1282 = dma.hbm_to_vmem [thread:$0]  (!%p1573_p13), %s224_s19, 64, %s226_s21, %s214_s23  }
  0x24   : > { %p231_p2 = pnand %p1063_p0, %p230_p1 }
  0x25   : > { %s1594_s13 = sand.u32 (!%p231_p2), 1, %s1451_s26  }
  0x26   : > { %234 = sbr.rel (%p231_p2) target bundleno = 507 (0x1fb), region = 40  ;;  %s1064_s16 = sshll.u32 (!%p231_p2), %s1594_s13, 2 }
  0x27   : > { %s237_s17 = scalar_lea.sflag (!%p231_p2), [#allocation5], %s1594_s13  ;;  %s1600_s18 = scalar_lea.vmem (!%p231_p2), [#allocation4], %s1064_s16 }
  0x2b   : > { %1434 = dma.done.wait (%p1549_p6), %s237_s17, 64  }
  0x2c   : > { %1436 = vsyncadd (%p1549_p6), %s237_s17, 4294967232  ;;  %v1461_v0 = vmov 0   ;;  %v280_v1 = vld [vmem:[%s2244_s0 + $0x38] sm:$0xff]  ;;  %v278_v2 = vld [vmem:[%s2244_s0 + $0x28] sm:$0xff]  ;;  %v281_v9 = vlaneseq  ;;  %s1066_s21 = sshll.u32 %s1527_s3, 9  ;;  %v1462_v23 = vmov 1.0  }
  0x2d   : > { %1328 = vset.pattern.permute.xlu1 %v1461_v0  ;;  %1327 = vset.pattern.permute.xlu0 %v1461_v0  ;;  %v276_v3 = vld [vmem:[%s2244_s0 + $0x18] sm:$0xff]  ;;  %v279_v4 = vld [vmem:[%s2244_s0 + $0x30] sm:$0xff]  ;;  %v277_v5 = vld [vmem:[%s2244_s0 + $0x20] sm:$0xff]  ;;  %v1632_v14 = vstv %s1066_s21  ;;  %s2196_s24 = scalar_lea.vmem [#allocation7], %s1064_s16  ;;  %p1263_p6 = scmp.ne.s32.totalorder %s1527_s3, 0 }
  0x2e   : > { %1329 = vset.pattern.permute.xlu2 %v1461_v0  ;;  %313 = vperm.xlu0 %1327, %v280_v1   ;;  %v275_v6 = vld [vmem:[%s2244_s0 + $0x10] sm:$0xff]  ;;  %v274_v7 = vld [vmem:[%s2244_s0 + $0x8] sm:$0xff]  ;;  %v273_v8 = vld [vmem:[%s2244_s0] sm:$0xff]  ;;  %v282_v10 = vand.u32 127, %v281_v9  ;;  %v1649_v20 = vshrl.u32 %v281_v9, 7 }
  0x2f   : > { %307 = vperm.xlu1 %1328, %v278_v2   ;;  %301 = vperm.xlu2 %1329, %v276_v3   ;;  %v1718_v43 = vld [vmem:[%s2245_s1] ss:$0 sm:$0xff] }
  0x30   : > { %v283_v11 = vadd.s32 128, %v282_v10  ;;  %v284_v12 = vadd.s32 256, %v282_v10  ;;  %v285_v13 = vadd.s32 384, %v282_v10  ;;  %v1637_v16 = vadd.s32 %v1632_v14, %v282_v10 }
  0x31   : > { %v532_v24 = vadd.s32 120, %v1649_v20  ;;  %v548_v25 = vadd.s32 248, %v1649_v20  ;;  %v564_v26 = vadd.s32 376, %v1649_v20  ;;  %v580_v27 = vadd.s32 504, %v1649_v20 }
  0x32   : > { %v1640_v17 = vadd.s32 %v1632_v14, %v283_v11  ;;  %v1643_v18 = vadd.s32 %v1632_v14, %v284_v12  ;;  %v1646_v19 = vadd.s32 %v1632_v14, %v285_v13  ;;  %v531_v28 = vadd.s32 112, %v1649_v20 }
  0x33   : > { %v547_v30 = vadd.s32 240, %v1649_v20  ;;  %v563_v31 = vadd.s32 368, %v1649_v20  ;;  %v579_v32 = vadd.s32 496, %v1649_v20  ;;  %v1674_v33 = vadd.s32 %v532_v24, %v1632_v14 }
  0x34   : > { %v1681_v35 = vadd.s32 %v548_v25, %v1632_v14  ;;  %v1684_v36 = vadd.s32 %v564_v26, %v1632_v14  ;;  %v1687_v37 = vadd.s32 %v580_v27, %v1632_v14  ;;  %v1690_v38 = vadd.s32 %v531_v28, %v1632_v14 }
  0x35   : > { %v1707_v40 = vadd.s32 %v547_v30, %v1632_v14  ;;  %v1710_v41 = vadd.s32 %v563_v31, %v1632_v14  ;;  %v1713_v42 = vadd.s32 %v579_v32, %v1632_v14  ;;  %v530_v44 = vadd.s32 104, %v1649_v20 }
  0x36   : > { %310 = vperm.xlu0 %1327, %v279_v4   ;;  %v546_v45 = vadd.s32 232, %v1649_v20  ;;  %v562_v46 = vadd.s32 360, %v1649_v20  ;;  %v578_v47 = vadd.s32 488, %v1649_v20  ;;  %v529_v48 = vadd.s32 96, %v1649_v20 }
  0x37   : > { %304 = vperm.xlu1 %1328, %v277_v5   ;;  %298 = vperm.xlu2 %1329, %v275_v6   ;;  %v545_v49 = vadd.s32 224, %v1649_v20  ;;  %v561_v50 = vadd.s32 352, %v1649_v20  ;;  %v577_v51 = vadd.s32 480, %v1649_v20  ;;  %v1751_v52 = vadd.s32 %v530_v44, %v1632_v14 }
  0x38   : > { %v1754_v53 = vadd.s32 %v546_v45, %v1632_v14  ;;  %v1769_v55 = vadd.s32 %v562_v46, %v1632_v14  ;;  %v1772_v56 = vadd.s32 %v578_v47, %v1632_v14  ;;  %v528_v57 = vadd.s32 88, %v1649_v20 }
  0x39   : > { %v1788_v58 = vadd.s32 %v529_v48, %v1632_v14  ;;  %v1791_v59 = vadd.s32 %v545_v49, %v1632_v14  ;;  %v544_v60 = vadd.s32 216, %v1649_v20  ;;  %v1807_v62 = vadd.s32 %v561_v50, %v1632_v14 }
  0x3a   : > { %v1810_v63 = vadd.s32 %v577_v51, %v1632_v14  ;;  %v560_v0 = vadd.s32 344, %v1649_v20  ;;  %v576_v1 = vadd.s32 472, %v1649_v20  ;;  %v1837_v2 = vadd.s32 %v528_v57, %v1632_v14 }
  0x3b   : > { %v527_v3 = vadd.s32 80, %v1649_v20  ;;  %v1849_v4 = vadd.s32 %v544_v60, %v1632_v14  ;;  %v543_v5 = vadd.s32 208, %v1649_v20  ;;  %v559_v6 = vadd.s32 336, %v1649_v20 }
  0x3c   : > { %v526_v10 = vadd.s32 72, %v1649_v20  ;;  %v542_v11 = vadd.s32 200, %v1649_v20  ;;  %v1874_v12 = vadd.s32 %v576_v1, %v1632_v14  ;;  %v558_v13 = vadd.s32 328, %v1649_v20 }
  0x3d   : > { %v557_v26 = vadd.s32 320, %v1649_v20  ;;  %v524_v31 = vadd.s32 56, %v1649_v20  ;;  %v571_v44 = vadd.s32 432, %v1649_v20  ;;  %v522_v46 = vadd.s32 40, %v1649_v20 }
  0x3e   : > { %295 = vperm.xlu0 %1327, %v274_v7   ;;  %v575_v7 = vadd.s32 464, %v1649_v20  ;;  %v1919_v24 = vadd.s32 %v526_v10, %v1632_v14  ;;  %v1922_v25 = vadd.s32 %v542_v11, %v1632_v14  ;;  %v622_v27 = vadd.s32 %v558_v13, %v1632_v14 }
  0x3f   : > { %292 = vperm.xlu1 %1328, %v273_v8   ;;  %v1863_v8 = vadd.s32 %v560_v0, %v1632_v14  ;;  %v538_v47 = vadd.s32 168, %v1649_v20  ;;  %v554_v49 = vadd.s32 296, %v1649_v20  ;;  %v570_v50 = vadd.s32 424, %v1649_v20 }
  0x40   : > { %v537_v60 = vadd.s32 160, %v1649_v20  ;;  %v535_v13 = vadd.s32 144, %v1649_v20 }
  0x41   : > { %v618_v57 = vadd.s32 %v554_v49, %v1632_v14 }
  0x42   : > { %v601_v0 = vadd.s32 %v537_v60, %v1632_v14 }
  0x89   : > { %v1634_v15 = vpop.permute.xlu2 %301 }
  0x8a   : > { %vm327_vm4 = vcmp.eq.s32.totalorder %v1637_v16, %v1634_v15  ;;  %vm328_vm5 = vcmp.eq.s32.totalorder %v1640_v17, %v1634_v15  ;;  %vm329_vm6 = vcmp.eq.s32.totalorder %v1643_v18, %v1634_v15  ;;  %vm330_vm7 = vcmp.eq.s32.totalorder %v1646_v19, %v1634_v15 }
  0x8b   : > { %v574_v15 = vadd.s32 456, %v1649_v20 }
  0x8d   : > { %v638_v28 = vadd.s32 %v574_v15, %v1632_v14  ;;  %v551_v15 = vadd.s32 272, %v1649_v20 }
  0x91   : > { %v1664_v29 = vpop.permute.xlu2 %298 }
  0x92   : > { %vm323_vm12 = vcmp.eq.s32.totalorder %v1637_v16, %v1664_v29  ;;  %vm324_vm13 = vcmp.eq.s32.totalorder %v1640_v17, %v1664_v29  ;;  %vm325_vm14 = vcmp.eq.s32.totalorder %v1643_v18, %v1664_v29  ;;  %vm326_vm15 = vcmp.eq.s32.totalorder %v1646_v19, %v1664_v29 }
  0x93   : > { %v573_v29 = vadd.s32 448, %v1649_v20 }
  0xa0   : > { %v314_v21 = vpop.permute.xlu0 %313 }
  0xa1   : > { %v308_v22 = vpop.permute.xlu1 %307  ;;  %vm343_vm0 = vcmp.eq.s32.totalorder %v1637_v16, %v314_v21  ;;  %vm344_vm1 = vcmp.eq.s32.totalorder %v1640_v17, %v314_v21  ;;  %vm345_vm2 = vcmp.eq.s32.totalorder %v1643_v18, %v314_v21  ;;  %vm346_vm3 = vcmp.eq.s32.totalorder %v1646_v19, %v314_v21 }
  0xa2   : > { %1099 = vmatpush.msk.msra.mxu0 %vm343_vm0, %v1462_v23  ;;  %1108 = vmatpush.msk.msra.mxu1 %vm344_vm1, %v1462_v23  ;;  %vm335_vm0 = vcmp.eq.s32.totalorder %v1637_v16, %v308_v22  ;;  %vm336_vm1 = vcmp.eq.s32.totalorder %v1640_v17, %v308_v22  ;;  %v1905_v21 = vadd.s32 %v575_v7, %v1632_v14 }
  0xa3   : > { %1117 = vmatpush.msk.msra.mxu2 %vm345_vm2, %v1462_v23  ;;  %1126 = vmatpush.msk.msra.mxu3 %vm346_vm3, %v1462_v23  ;;  %vm337_vm2 = vcmp.eq.s32.totalorder %v1643_v18, %v308_v22  ;;  %vm338_vm3 = vcmp.eq.s32.totalorder %v1646_v19, %v308_v22  ;;  %v541_v22 = vadd.s32 192, %v1649_v20 }
  0xa5   : > { %v605_v32 = vadd.s32 %v541_v22, %v1632_v14 }
  0xa8   : > { %v311_v34 = vpop.permute.xlu0 %310 }
  0xa9   : > { %v305_v39 = vpop.permute.xlu1 %304  ;;  %vm339_vm8 = vcmp.eq.s32.totalorder %v1637_v16, %v311_v34  ;;  %vm340_vm9 = vcmp.eq.s32.totalorder %v1640_v17, %v311_v34  ;;  %vm341_vm10 = vcmp.eq.s32.totalorder %v1643_v18, %v311_v34  ;;  %vm342_vm11 = vcmp.eq.s32.totalorder %v1646_v19, %v311_v34 }
  0xaa   : > { %1100 = vmatpush.msk.msra.mxu0 %vm339_vm8, %v1462_v23  ;;  %1109 = vmatpush.msk.msra.mxu1 %vm340_vm9, %v1462_v23  ;;  %vm331_vm8 = vcmp.eq.s32.totalorder %v1637_v16, %v305_v39  ;;  %vm332_vm9 = vcmp.eq.s32.totalorder %v1640_v17, %v305_v39  ;;  %v621_v34 = vadd.s32 %v557_v26, %v1632_v14 }
  0xab   : > { %1118 = vmatpush.msk.msra.mxu2 %vm341_vm10, %v1462_v23  ;;  %1127 = vmatpush.msk.msra.mxu3 %vm342_vm11, %v1462_v23  ;;  %vm333_vm10 = vcmp.eq.s32.totalorder %v1643_v18, %v305_v39  ;;  %vm334_vm11 = vcmp.eq.s32.totalorder %v1646_v19, %v305_v39  ;;  %v523_v39 = vadd.s32 48, %v1649_v20 }
  0xac   : > { %1101 = vmatpush.msk.msra.mxu0 %vm335_vm0, %v1462_v23  ;;  %1110 = vmatpush.msk.msra.mxu1 %vm336_vm1, %v1462_v23  ;;  %vm662_vm0 = vcmp.eq.s32.totalorder %v1674_v33, %v1718_v43  ;;  %vm678_vm1 = vcmp.eq.s32.totalorder %v1681_v35, %v1718_v43  ;;  %v540_v33 = vadd.s32 184, %v1649_v20  ;;  %v556_v35 = vadd.s32 312, %v1649_v20 }
  0xad   : > { %1119 = vmatpush.msk.msra.mxu2 %vm337_vm2, %v1462_v23  ;;  %1128 = vmatpush.msk.msra.mxu3 %vm338_vm3, %v1462_v23  ;;  %vm694_vm2 = vcmp.eq.s32.totalorder %v1684_v36, %v1718_v43  ;;  %vm710_vm3 = vcmp.eq.s32.totalorder %v1687_v37, %v1718_v43  ;;  %v637_v36 = vadd.s32 %v573_v29, %v1632_v14  ;;  %v572_v37 = vadd.s32 440, %v1649_v20 }
  0xae   : > { %1102 = vmatpush.msk.msra.mxu0 %vm331_vm8, %v1462_v23  ;;  %1111 = vmatpush.msk.msra.mxu1 %vm332_vm9, %v1462_v23  ;;  %vm709_vm8 = vcmp.eq.s32.totalorder %v1713_v42, %v1718_v43  ;;  %vm708_vm9 = vcmp.eq.s32.totalorder %v1772_v56, %v1718_v43  ;;  %v555_v42 = vadd.s32 304, %v1649_v20  ;;  %v620_v45 = vadd.s32 %v556_v35, %v1632_v14 }
  0xaf   : > { %1120 = vmatpush.msk.msra.mxu2 %vm333_vm10, %v1462_v23  ;;  %1129 = vmatpush.msk.msra.mxu3 %vm334_vm11, %v1462_v23  ;;  %vm659_vm10 = vcmp.eq.s32.totalorder %v1788_v58, %v1718_v43  ;;  %vm691_vm11 = vcmp.eq.s32.totalorder %v1807_v62, %v1718_v43  ;;  %v636_v48 = vadd.s32 %v572_v37, %v1632_v14  ;;  %v569_v62 = vadd.s32 416, %v1649_v20 }
  0xb0   : > { %1103 = vmatpush.msk.msra.mxu0 %vm327_vm4, %v1462_v23  ;;  %1112 = vmatpush.msk.msra.mxu1 %vm328_vm5, %v1462_v23  ;;  %v296_v54 = vpop.permute.xlu0 %295  ;;  %vm661_vm4 = vcmp.eq.s32.totalorder %v1690_v38, %v1718_v43  ;;  %vm677_vm5 = vcmp.eq.s32.totalorder %v1707_v40, %v1718_v43  ;;  %v588_v38 = vadd.s32 %v524_v31, %v1632_v14  ;;  %v539_v40 = vadd.s32 176, %v1649_v20 }
  0xb1   : > { %1121 = vmatpush.msk.msra.mxu2 %vm329_vm6, %v1462_v23  ;;  %1130 = vmatpush.msk.msra.mxu3 %vm330_vm7, %v1462_v23  ;;  %v293_v61 = vpop.permute.xlu1 %292  ;;  %vm411_vm6 = vcmask 523264   ;;  %vm693_vm7 = vcmp.eq.s32.totalorder %v1710_v41, %v1718_v43  ;;  %v604_v41 = vadd.s32 %v540_v33, %v1632_v14  ;;  %v587_v51 = vadd.s32 %v523_v39, %v1632_v14 }
  0xb2   : > { %1104 = vmatpush.msk.msra.mxu0 %vm323_vm12, %v1462_v23  ;;  %1113 = vmatpush.msk.msra.mxu1 %vm324_vm13, %v1462_v23  ;;  %vm319_vm12 = vcmp.eq.s32.totalorder %v1637_v16, %v296_v54  ;;  %vm320_vm13 = vcmp.eq.s32.totalorder %v1640_v17, %v296_v54  ;;  %v602_v56 = vadd.s32 %v538_v47, %v1632_v14  ;;  %v549_v33 = vadd.s32 256, %v1649_v20 }
  0xb3   : > { %1122 = vmatpush.msk.msra.mxu2 %vm325_vm14, %v1462_v23  ;;  %1131 = vmatpush.msk.msra.mxu3 %vm326_vm15, %v1462_v23  ;;  %vm321_vm14 = vcmp.eq.s32.totalorder %v1643_v18, %v296_v54  ;;  %vm322_vm15 = vcmp.eq.s32.totalorder %v1646_v19, %v296_v54  ;;  %v635_v54 = vadd.s32 %v571_v44, %v1632_v14  ;;  %v565_v35 = vadd.s32 384, %v1649_v20 }
  0xb4   : > { %1105 = vmatpush.msk.msra.mxu0 %vm319_vm12, %v1462_v23  ;;  %1114 = vmatpush.msk.msra.mxu1 %vm320_vm13, %v1462_v23  ;;  %vm315_vm12 = vcmp.eq.s32.totalorder %v1637_v16, %v293_v61  ;;  %vm316_vm13 = vcmp.eq.s32.totalorder %v1640_v17, %v293_v61  ;;  %v1885_v16 = vadd.s32 %v527_v3, %v1632_v14  ;;  %v520_v3 = vadd.s32 24, %v1649_v20 }
  0xb5   : > { %1123 = vmatpush.msk.msra.mxu2 %vm321_vm14, %v1462_v23  ;;  %1132 = vmatpush.msk.msra.mxu3 %vm322_vm15, %v1462_v23  ;;  %vm317_vm14 = vcmp.eq.s32.totalorder %v1643_v18, %v293_v61  ;;  %vm318_vm15 = vcmp.eq.s32.totalorder %v1646_v19, %v293_v61  ;;  %v1888_v17 = vadd.s32 %v543_v5, %v1632_v14  ;;  %v525_v18 = vadd.s32 64, %v1649_v20 }
  0xb6   : > { %1106 = vmatpush.msk.msra.mxu0 %vm315_vm12, %v1462_v23  ;;  %1115 = vmatpush.msk.msra.mxu1 %vm316_vm13, %v1462_v23  ;;  %vm707_vm12 = vcmp.eq.s32.totalorder %v1810_v63, %v1718_v43  ;;  %vm658_vm13 = vcmp.eq.s32.totalorder %v1837_v2, %v1718_v43  ;;  %v1902_v19 = vadd.s32 %v559_v6, %v1632_v14  ;;  %v553_v61 = vadd.s32 288, %v1649_v20 }
  0xb7   : > { %1124 = vmatpush.msk.msra.mxu2 %vm317_vm14, %v1462_v23  ;;  %1133 = vmatpush.msk.msra.mxu3 %vm318_vm15, %v1462_v23  ;;  %v589_v30 = vadd.s32 %v525_v18, %v1632_v14  ;;  %vm2259_vm14 = vcmp.eq.s32.totalorder %v1769_v55, %v1718_v43  ;;  %vm656_vm15 = vcmp.eq.s32.totalorder %v1919_v24, %v1718_v43  ;;  %v552_v5 = vadd.s32 280, %v1649_v20 }
  0xb8   : > { %1125 = vmatmul.msk.f32.vlgmr.msra.gmra.mxu2 %vm411_vm6, %v1462_v23  ;;  %1134 = vmatmul.msk.f32.vlgmr.msra.gmra.mxu3 %vm411_vm6, %v1462_v23  ;;  %v586_v55 = vadd.s32 %v522_v46, %v1632_v14  ;;  %v634_v58 = vadd.s32 %v570_v50, %v1632_v14  ;;  %v617_v1 = vadd.s32 %v553_v61, %v1632_v14  ;;  %v568_v6 = vadd.s32 408, %v1649_v20 }
  0xb9   : > { %1116 = vmatmul.msk.f32.vlgmr.msra.gmra.mxu1 %vm411_vm6, %v1462_v23  ;;  %1107 = vmatmul.msk.f32.vlgmr.msra.gmra.mxu0 %vm411_vm6, %v1462_v23  ;;  %vm674_vm6 = vcmp.eq.s32.totalorder %v1849_v4, %v1718_v43  ;;  %v633_v2 = vadd.s32 %v569_v62, %v1632_v14  ;;  %v536_v4 = vadd.s32 152, %v1649_v20  ;;  %v584_v7 = vadd.s32 %v520_v3, %v1632_v14 }
  0xba   : > { %1199 = vmatpush.msk.msrb.mxu0 %vm662_vm0, %v1462_v23  ;;  %1215 = vmatpush.msk.msrb.mxu1 %vm678_vm1, %v1462_v23  ;;  %vm690_vm0 = vcmp.eq.s32.totalorder %v1863_v8, %v1718_v43  ;;  %vm706_vm1 = vcmp.eq.s32.totalorder %v1874_v12, %v1718_v43  ;;  %v616_v10 = vadd.s32 %v552_v5, %v1632_v14  ;;  %v519_v12 = vadd.s32 16, %v1649_v20 }
  0xbb   : > { %1231 = vmatpush.msk.msrb.mxu2 %vm694_vm2, %v1462_v23  ;;  %1247 = vmatpush.msk.msrb.mxu3 %vm710_vm3, %v1462_v23  ;;  %vm657_vm2 = vcmp.eq.s32.totalorder %v1885_v16, %v1718_v43  ;;  %vm673_vm3 = vcmp.eq.s32.totalorder %v1888_v17, %v1718_v43  ;;  %v600_v8 = vadd.s32 %v536_v4, %v1632_v14  ;;  %v567_v17 = vadd.s32 400, %v1649_v20 }
  0xbc   : > { %1200 = vmatpush.msk.msrb.mxu0 %vm661_vm4, %v1462_v23  ;;  %1216 = vmatpush.msk.msrb.mxu1 %vm677_vm5, %v1462_v23  ;;  %vm2257_vm4 = vcmp.eq.s32.totalorder %v1751_v52, %v1718_v43  ;;  %vm2258_vm5 = vcmp.eq.s32.totalorder %v1754_v53, %v1718_v43  ;;  %v603_v52 = vadd.s32 %v539_v40, %v1632_v14  ;;  %v534_v24 = vadd.s32 136, %v1649_v20 }
  0xbd   : > { %1232 = vmatpush.msk.msrb.mxu2 %vm693_vm7, %v1462_v23  ;;  %1248 = vmatpush.msk.msrb.mxu3 %vm709_vm8, %v1462_v23  ;;  %vm689_vm7 = vcmp.eq.s32.totalorder %v1902_v19, %v1718_v43  ;;  %vm705_vm8 = vcmp.eq.s32.totalorder %v1905_v21, %v1718_v43  ;;  %v619_v53 = vadd.s32 %v555_v42, %v1632_v14  ;;  %v518_v21 = vadd.s32 8, %v1649_v20 }
  0xbe   : > { %1201 = vmatpush.msk.msrb.mxu0 %vm2257_vm4, %v1462_v23  ;;  %1217 = vmatpush.msk.msrb.mxu1 %vm2258_vm5, %v1462_v23  ;;  %vm672_vm4 = vcmp.eq.s32.totalorder %v1922_v25, %v1718_v43  ;;  %vm2260_vm5 = vcmp.eq.s32.totalorder %v1791_v59, %v1718_v43  ;;  %v521_v59 = vadd.s32 32, %v1649_v20  ;;  %v632_v11 = vadd.s32 %v568_v6, %v1632_v14 }
  0xbf   : > { %1233 = vmatpush.msk.msrb.mxu2 %vm2259_vm14, %v1462_v23  ;;  %1249 = vmatpush.msk.msrb.mxu3 %vm708_vm9, %v1462_v23  ;;  %vm688_vm9 = vcmp.eq.s32.totalorder %v622_v27, %v1718_v43  ;;  %vm704_vm14 = vcmp.eq.s32.totalorder %v638_v28, %v1718_v43  ;;  %v583_v16 = vadd.s32 %v519_v12, %v1632_v14  ;;  %v550_v25 = vadd.s32 264, %v1649_v20 }
  0xc0   : > { %1202 = vmatpush.msk.msrb.mxu0 %vm659_vm10, %v1462_v23  ;;  %1218 = vmatpush.msk.msrb.mxu1 %vm2260_vm5, %v1462_v23  ;;  %vm655_vm10 = vcmp.eq.s32.totalorder %v589_v30, %v1718_v43  ;;  %vm668_vm5 = vcmp.eq.s32.totalorder %v602_v56, %v1718_v43  ;;  %v585_v63 = vadd.s32 %v521_v59, %v1632_v14  ;;  %v566_v27 = vadd.s32 392, %v1649_v20 }
  0xc1   : > { %1234 = vmatpush.msk.msrb.mxu2 %vm691_vm11, %v1462_v23  ;;  %1250 = vmatpush.msk.msrb.mxu3 %vm707_vm12, %v1462_v23  ;;  %vm671_vm11 = vcmp.eq.s32.totalorder %v605_v32, %v1718_v43  ;;  %vm687_vm12 = vcmp.eq.s32.totalorder %v621_v34, %v1718_v43  ;;  %v599_v18 = vadd.s32 %v535_v13, %v1632_v14  ;;  %v533_v30 = vadd.s32 128, %v1649_v20 }
  0xc2   : > { %1203 = vmatpush.msk.msrb.mxu0 %vm658_vm13, %v1462_v23  ;;  %1219 = vmatpush.msk.msrb.mxu1 %vm674_vm6, %v1462_v23  ;;  %vm703_vm13 = vcmp.eq.s32.totalorder %v637_v36, %v1718_v43  ;;  %vm654_vm6 = vcmp.eq.s32.totalorder %v588_v38, %v1718_v43  ;;  %v615_v19 = vadd.s32 %v551_v15, %v1632_v14 }
  0xc3   : > { %1235 = vmatpush.msk.msrb.mxu2 %vm690_vm0, %v1462_v23  ;;  %1251 = vmatpush.msk.msrb.mxu3 %vm706_vm1, %v1462_v23  ;;  %vm670_vm0 = vcmp.eq.s32.totalorder %v604_v41, %v1718_v43  ;;  %vm686_vm1 = vcmp.eq.s32.totalorder %v620_v45, %v1718_v43  ;;  %v631_v22 = vadd.s32 %v567_v17, %v1632_v14  ;;  %v495_v45 = vld [vmem:[%s1600_s18] sm:$0xf] }
  0xc4   : > { %1204 = vmatpush.msk.msrb.mxu0 %vm657_vm2, %v1462_v23  ;;  %1220 = vmatpush.msk.msrb.mxu1 %vm673_vm3, %v1462_v23  ;;  %vm702_vm2 = vcmp.eq.s32.totalorder %v636_v48, %v1718_v43  ;;  %vm653_vm3 = vcmp.eq.s32.totalorder %v587_v51, %v1718_v43  ;;  %v582_v26 = vadd.s32 %v518_v21, %v1632_v14 }
  0xc5   : > { %1236 = vmatpush.msk.msrb.mxu2 %vm689_vm7, %v1462_v23  ;;  %1252 = vmatpush.msk.msrb.mxu3 %vm705_vm8, %v1462_v23  ;;  %vm669_vm7 = vcmp.eq.s32.totalorder %v603_v52, %v1718_v43  ;;  %vm685_vm8 = vcmp.eq.s32.totalorder %v619_v53, %v1718_v43  ;;  %v598_v28 = vadd.s32 %v534_v24, %v1632_v14 }
  0xc6   : > { %1205 = vmatpush.msk.msrb.mxu0 %vm656_vm15, %v1462_v23  ;;  %1221 = vmatpush.msk.msrb.mxu1 %vm672_vm4, %v1462_v23  ;;  %vm701_vm15 = vcmp.eq.s32.totalorder %v635_v54, %v1718_v43  ;;  %vm652_vm4 = vcmp.eq.s32.totalorder %v586_v55, %v1718_v43  ;;  %v614_v29 = vadd.s32 %v550_v25, %v1632_v14 }
  0xc7   : > { %1237 = vmatpush.msk.msrb.mxu2 %vm688_vm9, %v1462_v23  ;;  %1253 = vmatpush.msk.msrb.mxu3 %vm704_vm14, %v1462_v23  ;;  %vm684_vm9 = vcmp.eq.s32.totalorder %v618_v57, %v1718_v43  ;;  %vm700_vm14 = vcmp.eq.s32.totalorder %v634_v58, %v1718_v43  ;;  %v630_v31 = vadd.s32 %v566_v27, %v1632_v14 }
  0xc8   : > { %1206 = vmatpush.msk.msrb.mxu0 %vm655_vm10, %v1462_v23  ;;  %1222 = vmatpush.msk.msrb.mxu1 %vm671_vm11, %v1462_v23  ;;  %vm651_vm10 = vcmp.eq.s32.totalorder %v585_v63, %v1718_v43  ;;  %vm667_vm11 = vcmp.eq.s32.totalorder %v601_v0, %v1718_v43  ;;  %v581_v32 = vadd.s32 %v1649_v20, %v1632_v14 }
  0xc9   : > { %1238 = vmatpush.msk.msrb.mxu2 %vm687_vm12, %v1462_v23  ;;  %1254 = vmatpush.msk.msrb.mxu3 %vm703_vm13, %v1462_v23  ;;  %vm683_vm12 = vcmp.eq.s32.totalorder %v617_v1, %v1718_v43  ;;  %vm699_vm13 = vcmp.eq.s32.totalorder %v633_v2, %v1718_v43  ;;  %v597_v34 = vadd.s32 %v533_v30, %v1632_v14 }
  0xca   : > { %1207 = vmatpush.msk.msrb.mxu0 %vm654_vm6, %v1462_v23  ;;  %1223 = vmatpush.msk.msrb.mxu1 %vm670_vm0, %v1462_v23  ;;  %vm650_vm6 = vcmp.eq.s32.totalorder %v584_v7, %v1718_v43  ;;  %vm666_vm0 = vcmp.eq.s32.totalorder %v600_v8, %v1718_v43  ;;  %v613_v36 = vadd.s32 %v549_v33, %v1632_v14 }
  0xcb   : > { %1239 = vmatpush.msk.msrb.mxu2 %vm686_vm1, %v1462_v23  ;;  %1255 = vmatpush.msk.msrb.mxu3 %vm702_vm2, %v1462_v23  ;;  %vm682_vm1 = vcmp.eq.s32.totalorder %v616_v10, %v1718_v43  ;;  %vm698_vm2 = vcmp.eq.s32.totalorder %v632_v11, %v1718_v43  ;;  %v629_v37 = vadd.s32 %v565_v35, %v1632_v14 }
  0xcc   : > { %1208 = vmatpush.msk.msrb.mxu0 %vm653_vm3, %v1462_v23  ;;  %1224 = vmatpush.msk.msrb.mxu1 %vm669_vm7, %v1462_v23  ;;  %vm649_vm3 = vcmp.eq.s32.totalorder %v583_v16, %v1718_v43  ;;  %vm665_vm7 = vcmp.eq.s32.totalorder %v599_v18, %v1718_v43 }
  0xcd   : > { %1240 = vmatpush.msk.msrb.mxu2 %vm685_vm8, %v1462_v23  ;;  %1256 = vmatpush.msk.msrb.mxu3 %vm701_vm15, %v1462_v23  ;;  %vm681_vm8 = vcmp.eq.s32.totalorder %v615_v19, %v1718_v43  ;;  %vm697_vm15 = vcmp.eq.s32.totalorder %v631_v22, %v1718_v43 }
  0xce   : > { %1209 = vmatpush.msk.msrb.mxu0 %vm652_vm4, %v1462_v23  ;;  %1225 = vmatpush.msk.msrb.mxu1 %vm668_vm5, %v1462_v23  ;;  %vm648_vm4 = vcmp.eq.s32.totalorder %v582_v26, %v1718_v43  ;;  %vm664_vm5 = vcmp.eq.s32.totalorder %v598_v28, %v1718_v43 }
  0xcf   : > { %1241 = vmatpush.msk.msrb.mxu2 %vm684_vm9, %v1462_v23  ;;  %1257 = vmatpush.msk.msrb.mxu3 %vm700_vm14, %v1462_v23  ;;  %vm680_vm9 = vcmp.eq.s32.totalorder %v614_v29, %v1718_v43  ;;  %vm696_vm14 = vcmp.eq.s32.totalorder %v630_v31, %v1718_v43 }
  0xd0   : > { %1210 = vmatpush.msk.msrb.mxu0 %vm651_vm10, %v1462_v23  ;;  %1226 = vmatpush.msk.msrb.mxu1 %vm667_vm11, %v1462_v23  ;;  %vm647_vm10 = vcmp.eq.s32.totalorder %v581_v32, %v1718_v43  ;;  %vm663_vm11 = vcmp.eq.s32.totalorder %v597_v34, %v1718_v43 }
  0xd1   : > { %1242 = vmatpush.msk.msrb.mxu2 %vm683_vm12, %v1462_v23  ;;  %1258 = vmatpush.msk.msrb.mxu3 %vm699_vm13, %v1462_v23  ;;  %vm679_vm12 = vcmp.eq.s32.totalorder %v613_v36, %v1718_v43  ;;  %vm695_vm13 = vcmp.eq.s32.totalorder %v629_v37, %v1718_v43 }
  0xd2   : > { %1211 = vmatpush.msk.msrb.mxu0 %vm650_vm6, %v1462_v23  ;;  %1227 = vmatpush.msk.msrb.mxu1 %vm666_vm0, %v1462_v23  ;;  %vm503_vm6 = vcmask 1040384   ;;  %vm505_vm0 = vcmask 1042434  }
  0xd3   : > { %1243 = vmatpush.msk.msrb.mxu2 %vm682_vm1, %v1462_v23  ;;  %1259 = vmatpush.msk.msrb.mxu3 %vm698_vm2, %v1462_v23  ;;  %vm507_vm1 = vcmask 1041408   ;;  %vm513_vm2 = vcmp.lt.s32.totalorder %v281_v9, 512 }
  0xd4   : > { %1212 = vmatpush.msk.msrb.mxu0 %vm649_vm3, %v1462_v23  ;;  %1228 = vmatpush.msk.msrb.mxu1 %vm665_vm7, %v1462_v23 }
  0xd5   : > { %1244 = vmatpush.msk.msrb.mxu2 %vm681_vm8, %v1462_v23  ;;  %1260 = vmatpush.msk.msrb.mxu3 %vm697_vm15, %v1462_v23 }
  0xd6   : > { %1213 = vmatpush.msk.msrb.mxu0 %vm648_vm4, %v1462_v23  ;;  %1229 = vmatpush.msk.msrb.mxu1 %vm664_vm5, %v1462_v23 }
  0xd7   : > { %1245 = vmatpush.msk.msrb.mxu2 %vm680_vm9, %v1462_v23  ;;  %1261 = vmatpush.msk.msrb.mxu3 %vm696_vm14, %v1462_v23 }
  0xd8   : > { %1214 = vmatpush.msk.msrb.mxu0 %vm647_vm10, %v1462_v23  ;;  %1230 = vmatpush.msk.msrb.mxu1 %vm663_vm11, %v1462_v23 }
  0xd9   : > { %1246 = vmatpush.msk.msrb.mxu2 %vm679_vm12, %v1462_v23  ;;  %1262 = vmatpush.msk.msrb.mxu3 %vm695_vm13, %v1462_v23 }
 0x136   : > { %v452_v20 = vpop.f32.mrf.mxu1  ;;  %v432_v39 = vpop.f32.mrf.mxu0 }
 0x137   : > { %v500_v38 = vrot.slane %v452_v20, 7 }
 0x139   : > { %v504_v44 = vsel %vm503_vm6, %v432_v39, %v500_v38 }
 0x13b   : > { %v472_v40 = vpop.f32.mrf.mxu2  ;;  %v492_v41 = vpop.f32.mrf.mxu3 }
 0x13c   : > { %v501_v14 = vrot.slane %v472_v40, 6  ;;  %v502_v42 = vrot.slane %v492_v41, 5 }
 0x13e   : > { %v506_v46 = vsel %vm505_vm0, %v501_v14, %v502_v42 }
 0x13f   : > { %v508_v47 = vsel %vm507_vm1, %v504_v44, %v506_v46 }
 0x140   : > { %v510_v43 = vadd.f32 %v508_v47, %v495_v45 }
 0x142   : > { %515 = vst.msk [vmem:[%s2196_s24] sm:$0xf] %vm513_vm2, %v510_v43  ;;  %v840_v23 = vperm.slane %v510_v43, 0  ;;  %v841_v48 = vperm.slane %v510_v43, 1  ;;  %v842_v49 = vperm.slane %v510_v43, 2  ;;  %v843_v50 = vperm.slane %v510_v43, 3 }
 0x144   : > { %864 = vmatmul.f32.vlgmr.msrb.gmra.mxu0 %v840_v23  ;;  %884 = vmatmul.f32.vlgmr.msrb.gmra.mxu1 %v841_v48 }
 0x145   : > { %904 = vmatmul.f32.vlgmr.msrb.gmra.mxu2 %v842_v49  ;;  %924 = vmatmul.f32.vlgmr.msrb.gmra.mxu3 %v843_v50 }
 0x1c1   : > { %v865_v51 = vpop.f32.mrf.mxu0  ;;  %v885_v52 = vpop.f32.mrf.mxu1 }
 0x1c2   : > { %v886_v53 = vadd.f32 %v885_v52, %v865_v51 }
 0x1c7   : > { %931 = sbr.rel (%p1263_p6) target bundleno = 462 (0x1ce), region = 48 }
 0x1c8   : > { %v905_v54 = vpop.f32.mrf.mxu2  ;;  %v925_v9 = vpop.f32.mrf.mxu3 }
 0x1c9   : > { %v906_v55 = vadd.f32 %v905_v54, %v886_v53 }
 0x1cb   : > { %v926_v56 = vadd.f32 %v925_v9, %v906_v55 }
 0x1cc   : > { %v1463_v57 = vmov 0.0  }
 0x1cd   : > { %932 = vst [vmem:[#allocation8] sm:$0x1] %v1463_v57 }
 0x1ce PF: > { %p1264_p7 = scmp.ne.s32.totalorder %s1527_s3, 1 }
 0x1cf   : > { %s941_s16 = sld [smem:[#allocation2]] (!%p1264_p7) }
 0x1d0   : > { %s944_s18 = sld [smem:[#allocation3]] (!%p1264_p7) }
 0x1d3   : > { %939 = sbr.rel (%p1264_p7) target bundleno = 484 (0x1e4), region = 52 }
 0x1d4   : > { %v933_v58 = vld [vmem:[#allocation8] sm:$0x1] }
 0x1d5   : > { %v934_v59 = vadd.f32 %v933_v58, %v926_v56 }
 0x1d7   : > { %935 = vst [vmem:[#allocation8] sm:$0x1] %v934_v59 }
 0x1d8   : > { %v942_v61 = vstv %s941_s16  ;;  %v945_v63 = vstv %s944_s18 }
 0x1de   : > { %v940_v60 = vld [vmem:[#allocation8] sm:$0x1] }
 0x1df   : > { %v943_v62 = vmul.f32 %v942_v61, %v940_v60 }
 0x1e1   : > { %v946_v0 = vmax.f32 %v943_v62, %v945_v63 }
 0x1e3   : > { %947 = vst [vmem:[#allocation8] sm:$0x1] %v946_v0 }
 0x1e4 PF: > { %s1266_s10 = sshll.u32 %s1527_s3, 2  ;;  %s961_s9 = sshll.u32 %s2196_s24, 4  ;;  %s962_s9 = int_to_ptr.vmem [resolvable:$true] %s961_s9 }
 0x1e5   : > { %s959_s7 = scalar_lea.hbm %s2249_s5, %s1266_s10  ;;  %s949_s15 = scalar_lea.sflag [#allocation6], %s1594_s13 }
 0x1e6   : > { %s963_s14 = sshll.u32 %s959_s7, 4  ;;  %s1381_s22 = scalar_lea.hbm %s2249_s5, 8  ;;  %s964_s14 = int_to_ptr.hbm [resolvable:$true] %s963_s14 }
 0x1e7   : > { %s1375_s17 = sshra.s32 %s964_s14, 4  ;;  %s1376_s17 = int_to_ptr.hbm [resolvable:$true] %s1375_s17 }
 0x1e8   : > { %s1377_s19 = scalar_lea.hbm %s1376_s17, 4  ;;  %p1382_p1 = scmp.lt.s32.totalorder %s1376_s17, %s2249_s5 }
 0x1e9   : > { %p1378_p9 = scmp.ne.s32.totalorder %s1376_s17, %s1377_s19  ;;  %p1383_p3 = scmp.lt.s32.totalorder %s1381_s22, %s1377_s19 }
 0x1eb   : > { %p1379_p13 = pnand %p1378_p9, %p1558_p11  ;;  %p1384_p4 = por %p1383_p3, %p1382_p1 }
 0x1ed   : > { %p1380_p0 = pneg %p1379_p13 }
 0x1ef   : > { %p1385_p8 = pnand %p1384_p4, %p1380_p0 }
 0x1f1   : > { %1388 = shalt.err (!%p1385_p8)
}
 0x1f2   : > { %1273 = dma.vmem_to_hbm [thread:$0]  (%p1558_p11), %s962_s9, 64, %s964_s14, %s949_s15  }
 0x1f3   : > { %s1464_s13 = smov [#allocation8]   ;;  %s975_s4 = sshll.u32 %s2250_s6, 4  ;;  %s976_s4 = int_to_ptr.hbm [resolvable:$true] %s975_s4 }
 0x1f4   : > { %s973_s24 = sshll.u32 %s1464_s13, 4  ;;  %p2261_p5 = scmp.eq.s32.totalorder %s1527_s3, 1  ;;  %s974_s24 = int_to_ptr.vmem [resolvable:$true] %s973_s24 }
 0x1f6   : > { %1275 = dma.vmem_to_hbm [thread:$0]  (%p2261_p5), %s974_s24, 16, %s976_s4, [#allocation9]  }
 0x1f7   : > { %p2262_p10 = pmov %p2261_p5 }
 0x1f8   : > { %p2263_p2 = pmov %p2261_p5 }
 0x1f9   : > { %1438 = dma.done.wait (%p2262_p10), [#allocation9], 16  }
 0x1fa   : > { %1440 = vsyncadd (%p2263_p2), [#allocation9], 4294967280 }
 0x1fb PF: > { %s992_s11 = sand.u32 1, %s1447_s25   ;;  %p2264_p11 = scmp.ge.s32.totalorder %s1459_s28, 2 }
 0x1fc   : > { %s993_s30 = scalar_lea.sflag [#allocation6], %s992_s11 }
 0x1fd   : > { %p1284_p6 = pnand %p2264_p11, %p1562_p12 }
 0x1ff   : > { %p1285_p7 = pneg %p1284_p6 }
 0x201   : > { %1442 = dma.done.wait (%p1285_p7), %s993_s30, 64  }
 0x202   : > { %1444 = vsyncadd (%p1285_p7), %s993_s30, 4294967232  ;;  %p23_p9 = scmp.ge.s32.totalorder %s1531_s29, 4   ;;  %s2265_s25 = smov %s1451_s26 }
 0x203   : > { %s2266_s26 = smov %s1455_s27  ;;  %s2267_s27 = smov %s1543_s8 }
 0x204   : > { %s2268_s28 = smov %s1531_s29  ;;  %25 = sbr.rel (!%p23_p9) target bundleno = 9 (0x9), region = 101 }
 0x209   :  { %999 = vsyncpa [#allocation5], 1 }
 0x20a   :  { %1001 = vsyncpa [#allocation5 + $0x1], 1 }
 0x20b   :  { %1002 = vsyncpa [#allocation6], 1 }
 0x20c   :  { %1004 = vsyncpa [#allocation6 + $0x1], 1 }
 0x20d   :  { %1005 = vsyncpa [#allocation9], 1 }

</bundles_post_ra>
